<compile_context>
chip_gen: v7x
topology: tpu7x:2x2x1
jax: 0.10.0
libtpu: 0.0.40
codegen_flags: <defaults>
</compile_context>

<pallas_src>
import math
import functools

import jax
import jax.numpy as jnp
from jax.experimental import pallas as pl
from jax.experimental.pallas import tpu as pltpu

_EPS = 1e-5


def _bf16(x):
    return x.astype(jnp.bfloat16)


@functools.lru_cache(maxsize=None)
def _vmem_limit_bytes():
    """Scoped-VMEM limit derived per generation (v5e/v6e 128 MiB, v7x 64 MiB)."""
    cap = 64 * 1024 * 1024
    try:
        cap = int(getattr(pltpu.get_tpu_info(), "vmem_capacity_bytes", cap))
    except Exception:
        pass
    return min((cap * 3) // 4, 96 * 1024 * 1024)


def _pick_batch_tile(batch, seq, d_model, d_ff):
    """Largest batch tile that fits the per-generation VMEM budget and gives
    ~512 MXU rows; prefers >=2 grid steps (megacore) when that still leaves
    >=256 rows per step."""
    budget = max(_vmem_limit_bytes() - 8 * 1024 * 1024, 4 * 1024 * 1024)
    best = 1
    for bt in range(1, batch + 1):
        if batch % bt:
            continue
        rows = bt * seq
        act = 2 * 2 * rows * d_model * 4                       # in+out, double buffered
        scratch = 2 * rows * d_model * 4                       # resident act + attn scratch
        weights = 2 * 2 * (4 * d_model * d_model + 2 * d_model * d_ff)   # bf16 x2 buffers
        interm = rows * (3 * d_model + d_ff) * 4 + bt * seq * seq * 4
        if act + scratch + weights + interm <= budget:
            best = bt
        if rows >= 512:                                        # enough to fill the MXU
            break
    if best == batch and batch > 1:                            # keep both TCs busy if cheap
        for bt in range(batch // 2, 0, -1):
            if batch % bt == 0 and bt * seq >= 256:
                best = bt
                break
    return best


# ----------------------------------------------------------------------------
# Kernel 1: embedding projection + positional encoding (batch-blocked grid)
# ----------------------------------------------------------------------------

def _embed_kernel(x_ref, w_ref, b_ref, pos_ref, o_ref):
    bt, seq, din = x_ref.shape
    x = _bf16(x_ref[...].reshape(bt * seq, din))               # flatten -> MXU M = Bt*S
    y = jnp.dot(x, w_ref[...], preferred_element_type=jnp.float32) + b_ref[...]
    o_ref[...] = y.reshape(bt, seq, y.shape[-1]) + pos_ref[...]


def embed(x, emb_w, emb_b, pos, bt):
    B, S, Din = x.shape
    D = emb_w.shape[1]
    cost = pl.CostEstimate(
        flops=2 * B * S * Din * D,
        transcendentals=0,
        bytes_accessed=B * S * (Din + D) * 4 + Din * D * 2 + S * D * 4)
    return pl.pallas_call(
        _embed_kernel,
        out_shape=jax.ShapeDtypeStruct((B, S, D), jnp.float32),
        grid=(B // bt,),
        in_specs=[
            pl.BlockSpec((bt, S, Din), lambda b: (b, 0, 0)),
            pl.BlockSpec((Din, D), lambda b: (0, 0)),
            pl.BlockSpec((1, D), lambda b: (0, 0)),
            pl.BlockSpec((1, S, D), lambda b: (0, 0, 0)),
        ],
        out_specs=pl.BlockSpec((bt, S, D), lambda b: (b, 0, 0)),
        compiler_params=pltpu.CompilerParams(
            dimension_semantics=("parallel",),
            vmem_limit_bytes=_vmem_limit_bytes()),
        cost_estimate=cost,
    )(x, _bf16(emb_w), emb_b.reshape(1, D), pos)


# ----------------------------------------------------------------------------
# Kernel 2: full encoder stack — grid (batch_blocks, num_layers), activation
# stays resident in a VMEM scratch across the layer axis.
# ----------------------------------------------------------------------------

def _encoder_stack_kernel(x_ref, m_ref, wqkv_ref, bqkv_ref, wo_ref, bo_ref,
                          g1_ref, be1_ref, w1_ref, b1_ref, w2_ref, b2_ref,
                          g2_ref, be2_ref, o_ref, act_ref, attn_ref,
                          *, num_heads):
    bt, seq, d = x_ref.shape
    dh = d // num_heads
    rows = bt * seq
    scale = 1.0 / math.sqrt(dh)
    layer = pl.program_id(1)

    # Layer 0: pull the embedded activation into the resident VMEM scratch.
    @pl.when(layer == 0)
    def _():
        act_ref[...] = x_ref[...].reshape(rows, d)

    x = act_ref[...]                                            # (Bt*S, D) f32
    m = m_ref[...]                                              # (Bt, 1, S) additive mask

    # --- fused QKV projection on the flattened activation (bf16 MXU, f32 acc) ---
    qkv = jnp.dot(_bf16(x), wqkv_ref[0],
                  preferred_element_type=jnp.float32) + bqkv_ref[0]      # (Bt*S, 3D)
    q3 = qkv[:, :d].reshape(bt, seq, d)
    k3 = qkv[:, d:2 * d].reshape(bt, seq, d)
    v3 = qkv[:, 2 * d:].reshape(bt, seq, d)

    # --- per-head attention, batched over the Bt batch tile ---
    # TODO(synk): with head_dim < 128 the per-head column slices are not
    # lane-aligned; prefer head_dim >= 128 (or flash-style KV tiling for long S).
    for h in range(num_heads):
        qh = _bf16(q3[:, :, h * dh:(h + 1) * dh])
        kh = _bf16(k3[:, :, h * dh:(h + 1) * dh])
        vh = _bf16(v3[:, :, h * dh:(h + 1) * dh])
        s = jax.lax.dot_general(qh, kh, (((2,), (2,)), ((0,), (0,))),
                                preferred_element_type=jnp.float32)      # (Bt, S, S)
        s = s * scale + m
        s = s - jnp.max(s, axis=-1, keepdims=True)
        p = jnp.exp(s)
        p = p * pl.reciprocal(jnp.sum(p, axis=-1, keepdims=True), approx=True)
        oh = jax.lax.dot_general(_bf16(p), vh, (((2,), (1,)), ((0,), (0,))),
                                 preferred_element_type=jnp.float32)     # (Bt, S, Dh)
        attn_ref[:, :, h * dh:(h + 1) * dh] = oh   # concat via static column offsets

    # --- single out-projection matmul over the concatenated head outputs ---
    sa = jnp.dot(_bf16(attn_ref[...].reshape(rows, d)), wo_ref[0],
                 preferred_element_type=jnp.float32) + bo_ref[0]

    # --- residual + LayerNorm 1 (f32, biased variance like torch) ---
    h1 = x + sa
    mu = jnp.mean(h1, axis=-1, keepdims=True)
    var = jnp.mean((h1 - mu) ** 2, axis=-1, keepdims=True)
    h1 = (h1 - mu) * jax.lax.rsqrt(var + _EPS) * g1_ref[0] + be1_ref[0]

    # --- fused FFN on the flattened activation (FF intermediate stays on-chip) ---
    f = jnp.dot(_bf16(h1), w1_ref[0], preferred_element_type=jnp.float32) + b1_ref[0]
    f = jnp.maximum(f, 0.0)
    f = jnp.dot(_bf16(f), w2_ref[0], preferred_element_type=jnp.float32) + b2_ref[0]

    # --- residual + LayerNorm 2 ---
    h2 = h1 + f
    mu2 = jnp.mean(h2, axis=-1, keepdims=True)
    var2 = jnp.mean((h2 - mu2) ** 2, axis=-1, keepdims=True)
    y = (h2 - mu2) * jax.lax.rsqrt(var2 + _EPS) * g2_ref[0] + be2_ref[0]

    act_ref[...] = y                      # stays in VMEM for the next layer

    @pl.when(layer == pl.num_programs(1) - 1)
    def _():
        o_ref[...] = y.reshape(bt, seq, d)


def encoder_stack(x, mask_add, p, num_heads, bt):
    B, S, D = x.shape
    L, _, FF = p["w1"].shape
    rows = B * S
    cost = pl.CostEstimate(
        flops=2 * rows * L * (4 * D * D + 2 * D * FF) + 4 * B * L * S * S * D,
        transcendentals=B * L * num_heads * S * S,
        bytes_accessed=(2 * rows * D * 4
                        + L * (4 * D * D + 2 * D * FF) * 2
                        + L * (9 * D + FF) * 4 + B * S * 4))

    def w_spec(r, c):
        # Weight/bias blocks indexed by the layer axis -> double buffering
        # prefetches the next layer's weights while this layer computes.
        return pl.BlockSpec((1, r, c), lambda b, l: (l, 0, 0))

    kern = functools.partial(_encoder_stack_kernel, num_heads=num_heads)
    return pl.pallas_call(
        kern,
        out_shape=jax.ShapeDtypeStruct((B, S, D), jnp.float32),
        grid=(B // bt, L),
        in_specs=[
            pl.BlockSpec((bt, S, D), lambda b, l: (b, 0, 0)),   # embedded activation
            pl.BlockSpec((bt, 1, S), lambda b, l: (b, 0, 0)),   # additive key mask
            w_spec(D, 3 * D), w_spec(1, 3 * D),                 # W_qkv, b_qkv
            w_spec(D, D), w_spec(1, D),                         # W_o, b_o
            w_spec(1, D), w_spec(1, D),                         # ln1 gamma, beta
            w_spec(D, FF), w_spec(1, FF),                       # W_1, b_1
            w_spec(FF, D), w_spec(1, D),                        # W_2, b_2
            w_spec(1, D), w_spec(1, D),                         # ln2 gamma, beta
        ],
        out_specs=pl.BlockSpec((bt, S, D), lambda b, l: (b, 0, 0)),
        scratch_shapes=[pltpu.VMEM((bt * S, D), jnp.float32),   # resident activation
                        pltpu.VMEM((bt, S, D), jnp.float32)],   # concat'd head outputs
        compiler_params=pltpu.CompilerParams(
            dimension_semantics=("parallel", "arbitrary"),
            vmem_limit_bytes=_vmem_limit_bytes()),
        cost_estimate=cost,
    )(x, mask_add,
      _bf16(p["w_qkv"]), p["b_qkv"],
      _bf16(p["w_o"]), p["b_o"],
      p["g1"], p["be1"],
      _bf16(p["w1"]), p["b1"],
      _bf16(p["w2"]), p["b2"],
      p["g2"], p["be2"])


# ----------------------------------------------------------------------------
# Kernel 3: final LayerNorm + masked mean + fc, one invocation, lane-dense out
# ----------------------------------------------------------------------------

def _head_kernel(x_ref, w_ref, g_ref, b_ref, fcw_ref, fcb_ref, o_ref):
    x = x_ref[...]                                              # (B, S, D)
    mu = jnp.mean(x, axis=-1, keepdims=True)
    var = jnp.mean((x - mu) ** 2, axis=-1, keepdims=True)
    xn = (x - mu) * jax.lax.rsqrt(var + _EPS) * g_ref[...] + b_ref[...]
    pooled = jax.lax.dot_general(w_ref[...], xn, (((2,), (1,)), ((0,), (0,))),
                                 preferred_element_type=jnp.float32)     # (B, 1, D)
    pooled = pooled.reshape(pooled.shape[0], pooled.shape[2])            # (B, D)
    o_ref[...] = jnp.dot(pooled, fcw_ref[...],
                         preferred_element_type=jnp.float32) + fcb_ref[...]


def classifier_head(x, row_w, ln_g, ln_b, fc_w, fc_b):
    B, S, D = x.shape
    lanes = 128                                   # lane-dense padded output
    fcw_pad = jnp.zeros((D, lanes), jnp.float32).at[:, :1].set(fc_w)
    fcb_pad = jnp.zeros((1, lanes), jnp.float32).at[0, 0].set(fc_b[0])
    cost = pl.CostEstimate(flops=2 * B * S * D + 2 * B * D * lanes,
                           transcendentals=0,
                           bytes_accessed=B * S * D * 4 + B * lanes * 4)
    out = pl.pallas_call(
        _head_kernel,
        out_shape=jax.ShapeDtypeStruct((B, lanes), jnp.float32),
        grid=(1,),
        in_specs=[
            pl.BlockSpec((B, S, D), lambda i: (0, 0, 0)),
            pl.BlockSpec((B, 1, S), lambda i: (0, 0, 0)),
            pl.BlockSpec((1, D), lambda i: (0, 0)),
            pl.BlockSpec((1, D), lambda i: (0, 0)),
            pl.BlockSpec((D, lanes), lambda i: (0, 0)),
            pl.BlockSpec((1, lanes), lambda i: (0, 0)),
        ],
        out_specs=pl.BlockSpec((B, lanes), lambda i: (0, 0)),
        compiler_params=pltpu.CompilerParams(
            dimension_semantics=("arbitrary",),
            vmem_limit_bytes=_vmem_limit_bytes()),
        cost_estimate=cost,
    )(x, row_w, ln_g.reshape(1, D), ln_b.reshape(1, D), fcw_pad, fcb_pad)
    return out[:, :1]                                           # (B, 1)


# ----------------------------------------------------------------------------
# Parameter init (deterministic, mirrors the module's shapes; layer weights
# are stacked along a leading L axis for the layer grid dimension)
# ----------------------------------------------------------------------------

def _xavier(key, fan_in, fan_out):
    bound = math.sqrt(6.0 / (fan_in + fan_out))
    return jax.random.uniform(key, (fan_in, fan_out), minval=-bound,
                              maxval=bound, dtype=jnp.float32)


def init_params(key, input_dim, model_dim, num_heads, num_layers, dim_ff):
    D, FF, L = model_dim, dim_ff, num_layers
    keys = jax.random.split(key, 2 + 4 * L)

    def stack(fn):
        return jnp.stack([fn(l) for l in range(L)], axis=0)

    return {
        "emb_w": _xavier(keys[0], input_dim, D),
        "emb_b": jnp.zeros((D,), jnp.float32),
        "pos": jnp.zeros((1, 500, D), jnp.float32),   # nn.Parameter(zeros(1,500,D))
        "ln_g": jnp.ones((D,), jnp.float32),
        "ln_b": jnp.zeros((D,), jnp.float32),
        "fc_w": _xavier(keys[1], D, 1),
        "fc_b": jnp.zeros((1,), jnp.float32),
        "w_qkv": stack(lambda l: _xavier(keys[2 + 4 * l], D, 3 * D)),
        "b_qkv": jnp.zeros((L, 1, 3 * D), jnp.float32),
        "w_o": stack(lambda l: _xavier(keys[3 + 4 * l], D, D)),
        "b_o": jnp.zeros((L, 1, D), jnp.float32),
        "w1": stack(lambda l: _xavier(keys[4 + 4 * l], D, FF)),
        "b1": jnp.zeros((L, 1, FF), jnp.float32),
        "w2": stack(lambda l: _xavier(keys[5 + 4 * l], FF, D)),
        "b2": jnp.zeros((L, 1, D), jnp.float32),
        "g1": jnp.ones((L, 1, D), jnp.float32),
        "be1": jnp.zeros((L, 1, D), jnp.float32),
        "g2": jnp.ones((L, 1, D), jnp.float32),
        "be2": jnp.zeros((L, 1, D), jnp.float32),
    }


# ----------------------------------------------------------------------------
# Forward pass
# ----------------------------------------------------------------------------

def transformer_classifier(params, x, lengths, num_heads):
    B, S, _ = x.shape
    D = params["emb_w"].shape[1]
    FF = params["w1"].shape[2]
    assert D % num_heads == 0
    bt = _pick_batch_tile(B, S, D, FF)

    # embedding + positional encoding (fused, batch-blocked)
    h = embed(x, params["emb_w"], params["emb_b"], params["pos"][:, :S, :], bt)

    # key padding mask: True == padded position (as in create_attention_mask)
    pos_ids = jnp.arange(S)[None, :]
    pad = pos_ids >= lengths[:, None]                               # (B, S) bool
    mask_add = jnp.where(pad, -1e30, 0.0).astype(jnp.float32)[:, None, :]

    # all encoder layers in one fused kernel (activation resident in VMEM)
    h = encoder_stack(h, mask_add, params, num_heads, bt)

    # masked-mean row weights (guard against zero-length sequences)
    safe_len = jnp.maximum(lengths, 1).astype(jnp.float32)
    row_w = ((~pad).astype(jnp.float32) / safe_len[:, None])[:, None, :]

    # final LayerNorm + masked mean + fc (fused, single invocation) -> (B, 1)
    return classifier_head(h, row_w, params["ln_g"], params["ln_b"],
                           params["fc_w"], params["fc_b"])


# ----------------------------------------------------------------------------

if __name__ == "__main__":
    B, S = 2, 8
    input_dim, model_dim, num_heads, num_layers, dim_ff = 16, 32, 4, 2, 64

    key = jax.random.PRNGKey(0)
    kx, kp = jax.random.split(key)
    x = jax.random.normal(kx, (B, S, input_dim), dtype=jnp.float32)
    lengths = jnp.array([8, 5], dtype=jnp.int32)

    params = init_params(kp, input_dim, model_dim, num_heads, num_layers, dim_ff)

    logits = transformer_classifier(params, x, lengths, num_heads)
    logits = jax.block_until_ready(logits)
    assert logits.shape == (B, 1) and logits.dtype == jnp.float32
    assert bool(jnp.all(jnp.isfinite(logits)))
    print("KERNEL_OK")
</pallas_src>

<mosaic_0001>
module attributes {stable_mosaic.version = 11 : i64} {
  func.func @_embed_kernel(%arg0: i32, %arg1: memref<2x8x16xf32, #tpu.memory_space<vmem>>, %arg2: memref<16x32xbf16, #tpu.memory_space<vmem>>, %arg3: memref<1x32xf32, #tpu.memory_space<vmem>>, %arg4: memref<1x8x32xf32, #tpu.memory_space<vmem>>, %arg5: memref<2x8x32xf32, #tpu.memory_space<vmem>>) attributes {dimension_semantics = [#tpu.dimension_semantics<parallel>], iteration_bounds = array<i64: 1>, scalar_prefetch = 0 : i64, scratch_operands = 0 : i64, tpu.core_type = #tpu.core_type<tc>, window_params = [{transform_indices = @transform_0, window_bounds = array<i64: 2, 8, 16>}, {pipeline_mode = #tpu.pipeline_mode<synchronous>, transform_indices = @transform_1, window_bounds = array<i64: 16, 32>}, {pipeline_mode = #tpu.pipeline_mode<synchronous>, transform_indices = @transform_2, window_bounds = array<i64: 1, 32>}, {pipeline_mode = #tpu.pipeline_mode<synchronous>, transform_indices = @transform_3, window_bounds = array<i64: 1, 8, 32>}, {transform_indices = @transform_4, window_bounds = array<i64: 2, 8, 32>}]} {
    %c0 = arith.constant 0 : index
    %c0_0 = arith.constant 0 : index
    %c0_1 = arith.constant 0 : index
    %0 = vector.load %arg1[%c0, %c0_0, %c0_1] : memref<2x8x16xf32, #tpu.memory_space<vmem>>, vector<2x8x16xf32>
    %1 = vector.shape_cast %0 : vector<2x8x16xf32> to vector<16x16xf32>
    %2 = arith.truncf %1 : vector<16x16xf32> to vector<16x16xbf16>
    %c0_2 = arith.constant 0 : index
    %c0_3 = arith.constant 0 : index
    %3 = vector.load %arg2[%c0_2, %c0_3] : memref<16x32xbf16, #tpu.memory_space<vmem>>, vector<16x32xbf16>
    %cst = arith.constant dense<0.000000e+00> : vector<16x32xf32>
    %4 = tpu.matmul %2, %3, %cst {dimension_numbers = #tpu.dot_dimension_numbers<[1], [0], [0], [1], [0, 0, 1, 1], [], []>} : vector<16x16xbf16>, vector<16x32xbf16>, vector<16x32xf32> -> vector<16x32xf32>
    %c0_4 = arith.constant 0 : index
    %c0_5 = arith.constant 0 : index
    %5 = vector.load %arg3[%c0_4, %c0_5] : memref<1x32xf32, #tpu.memory_space<vmem>>, vector<1x32xf32>
    %6 = vector.broadcast %5 : vector<1x32xf32> to vector<16x32xf32>
    %7 = arith.addf %4, %6 : vector<16x32xf32>
    %8 = vector.shape_cast %7 : vector<16x32xf32> to vector<2x8x32xf32>
    %c0_6 = arith.constant 0 : index
    %c0_7 = arith.constant 0 : index
    %c0_8 = arith.constant 0 : index
    %9 = vector.load %arg4[%c0_6, %c0_7, %c0_8] : memref<1x8x32xf32, #tpu.memory_space<vmem>>, vector<1x8x32xf32>
    %10 = vector.broadcast %9 : vector<1x8x32xf32> to vector<2x8x32xf32>
    %11 = arith.addf %8, %10 : vector<2x8x32xf32>
    %c0_9 = arith.constant 0 : index
    %c0_10 = arith.constant 0 : index
    %c0_11 = arith.constant 0 : index
    %12 = vector.load %arg5[%c0_9, %c0_10, %c0_11] : memref<2x8x32xf32, #tpu.memory_space<vmem>>, vector<2x8x32xf32>
    tpu.vector_store %arg5[%c0_9, %c0_10, %c0_11], %11 {strides = array<i32>} : memref<2x8x32xf32, #tpu.memory_space<vmem>>, vector<2x8x32xf32>,
    return
  }
  func.func @transform_0(%arg0: i32) -> (i32, i32, i32) {
    %c0_i32 = arith.constant 0 : i32
    %c0_i32_0 = arith.constant 0 : i32
    %c0_i32_1 = arith.constant 0 : i32
    return %arg0, %c0_i32, %c0_i32_0 : i32, i32, i32
  }
  func.func @transform_1(%arg0: i32) -> (i32, i32) {
    %c0_i32 = arith.constant 0 : i32
    %c0_i32_0 = arith.constant 0 : i32
    %c0_i32_1 = arith.constant 0 : i32
    return %c0_i32, %c0_i32_0 : i32, i32
  }
  func.func @transform_2(%arg0: i32) -> (i32, i32) {
    %c0_i32 = arith.constant 0 : i32
    %c0_i32_0 = arith.constant 0 : i32
    %c0_i32_1 = arith.constant 0 : i32
    return %c0_i32, %c0_i32_0 : i32, i32
  }
  func.func @transform_3(%arg0: i32) -> (i32, i32, i32) {
    %c0_i32 = arith.constant 0 : i32
    %c0_i32_0 = arith.constant 0 : i32
    %c0_i32_1 = arith.constant 0 : i32
    %c0_i32_2 = arith.constant 0 : i32
    return %c0_i32, %c0_i32_0, %c0_i32_1 : i32, i32, i32
  }
  func.func @transform_4(%arg0: i32) -> (i32, i32, i32) {
    %c0_i32 = arith.constant 0 : i32
    %c0_i32_0 = arith.constant 0 : i32
    %c0_i32_1 = arith.constant 0 : i32
    return %arg0, %c0_i32, %c0_i32_0 : i32, i32, i32
  }
}

</mosaic_0001>

<bundles_post_ra>
// kernel: tpu_custom_call.1
= control target key start
LH: loop header
LB: loop body
LE: loop exit
PB: predicated region body
PF: predicated region fallthrough
CT: control target
= control target key end

     0   :  { %9 = vsyncpa [#allocation3], 0  ;;  %s309_s0 = inlined_call_operand.hbm [shape: f32[2,8,16], index: 0, kind: input, shape index: {}]   ;;  %s310_s1 = inlined_call_operand.hbm [shape: bf16[16,32], index: 1, kind: input, shape index: {}]   ;;  %s311_s2 = inlined_call_operand.vmem [shape: f32[1,32], index: 2, kind: input, shape index: {}]   ;;  %s312_s3 = inlined_call_operand.vmem [shape: f32[1,8,32], index: 3, kind: input, shape index: {}]   ;;  %s313_s4 = inlined_call_operand.hbm [shape: f32[2,8,32], index: 4, kind: output, shape index: {}]  }
   0x1   :  { %10 = vsyncpa [#allocation6], 0 }
   0x2   :  { %11 = vsyncpa [#allocation4], 0  ;;  %s227_s15 = smov [#allocation2]   ;;  %s155_s19 = scalar_lea.hbm %s309_s0, 256 }
   0x3   :  { %s17_s16 = sshll.u32 %s227_s15, 4  ;;  %p156_p0 = scmp.ne.s32.totalorder %s309_s0, %s155_s19  ;;  %s18_s16 = int_to_ptr.vmem [resolvable:$true] %s17_s16 }
   0x4   :  { %p159_p1 = scmp.lt.u32.totalorder %s155_s19, %s309_s0 }
   0x6   :  { %p161_p2 = pnand %p159_p1, %p156_p0 }
   0x8   :  { %164 = shalt.err (!%p161_p2)
}
   0x9   :  { %s165_s24 = scalar_lea.vmem %s18_s16, 256  ;;  %p170_p4 = scmp.lt.s32.totalorder %s18_s16, %s18_s16 }
   0xa   :  { %p166_p3 = scmp.ne.s32.totalorder %s18_s16, %s165_s24  ;;  %p171_p5 = scmp.lt.s32.totalorder %s165_s24, %s165_s24 }
   0xc   :  { %p172_p6 = por %p171_p5, %p170_p4 }
   0xe   :  { %p173_p7 = pnand %p172_p6, %p166_p3 }
  0x10   :  { %176 = shalt.err (!%p173_p7)
}
  0x11   :  { %s228_s25 = smov 128   ;;  %s229_s26 = smov 8  }
  0x12   :  { %23 = dma.hbm_to_vmem [thread:$0]  %s309_s0, 256, %s18_s16, [#allocation3], %s228_s25, %s228_s25, %s229_s26  }
  0x13   :  { %s230_s29 = smov [#allocation5]   ;;  %s177_s7 = scalar_lea.hbm %s310_s1, 128 }
  0x14   :  { %s29_s30 = sshll.u32 %s230_s29, 4  ;;  %p178_p8 = scmp.ne.s32.totalorder %s310_s1, %s177_s7  ;;  %s30_s30 = int_to_ptr.vmem [resolvable:$true] %s29_s30 }
  0x15   :  { %p181_p9 = scmp.lt.u32.totalorder %s177_s7, %s310_s1 }
  0x17   :  { %p183_p10 = pnand %p181_p9, %p178_p8 }
  0x19   :  { %186 = shalt.err (!%p183_p10)
}
  0x1a   :  { %s187_s12 = scalar_lea.vmem %s30_s30, 128  ;;  %p192_p12 = scmp.lt.s32.totalorder %s30_s30, %s30_s30 }
  0x1b   :  { %p188_p11 = scmp.ne.s32.totalorder %s30_s30, %s187_s12  ;;  %p193_p13 = scmp.lt.s32.totalorder %s187_s12, %s187_s12 }
  0x1d   :  { %p194_p0 = por %p193_p13, %p192_p12 }
  0x1f   :  { %p195_p1 = pnand %p194_p0, %p188_p11 }
  0x21   :  { %198 = shalt.err (!%p195_p1)
}
  0x22   :  { %s231_s0 = smov 64   ;;  %s232_s13 = smov 4  }
  0x23   :  { %35 = dma.hbm_to_vmem [thread:$0]  %s310_s1, 128, %s30_s30, [#allocation6], %s231_s0, %s231_s0, %s232_s13  }
  0x24   :  { %221 = dma.done.wait [#allocation3], 256  }
  0x25   :  { %222 = vsyncadd [#allocation3], 4294967040 }
  0x26   :  { %223 = dma.done.wait [#allocation6], 128  }
  0x27   :  { %224 = vsyncadd [#allocation6], 4294967168  ;;  %v233_v0 = vmov 0.0   ;;  %vm234_vm0 = vmmov 0   ;;  %v154_v1 = vld [vmem:[#allocation5] sm:$0xff]   ;;  %v47_v2 = vld [vmem:[#allocation2] sm:$0xff] }
  0x28   :  { %139 = vmatprep.subr.bf16.mxu0 %v233_v0  ;;  %141 = vmatprep.mubr.msk.bf16.mxu0 %vm234_vm0, %v233_v0  ;;  %v48_v3 = vld [vmem:[#allocation2 + $0x8] sm:$0xff]  ;;  %vm65_vm1 = vcmask 130048   ;;  %v134_v5 = vld [vmem:[%s311_s2] ss:$0 sm:$0xff]  ;;  %vm113_vm2 = vcmask 261120   ;;  %s235_s19 = smov [#allocation7]  }
  0x29   :  { %140 = vmatpush3.bf16.msra.mxu0 %v154_v1  ;;  %v49_v4 = vpack.c.bf16 %v48_v3, %v47_v2  ;;  %v110_v7 = vld [vmem:[%s312_s3] sm:$0xff]  ;;  %s121_s20 = sshll.u32 %s235_s19, 4  ;;  %s122_s20 = int_to_ptr.vmem [resolvable:$true] %s121_s20 }
  0x2a   :  { %s199_s21 = scalar_lea.vmem %s122_s20, 256  ;;  %p204_p3 = scmp.lt.s32.totalorder %s122_s20, %s122_s20 }
  0x2b   :  { %p200_p2 = scmp.ne.s32.totalorder %s122_s20, %s199_s21  ;;  %p205_p4 = scmp.lt.s32.totalorder %s199_s21, %s199_s21 }
  0x2c   :  { %142 = vmatmul.mubr.msk.bf16.vlgmr.msra.gmra.mrb[0].mxu0 %vm65_vm1, %v49_v4 }
  0x2d   :  { %p206_p5 = por %p205_p4, %p204_p3 }
  0x2f   :  { %p207_p6 = pnand %p206_p5, %p200_p2 }
  0xff   :  { %v103_v6 = vpop.f32.mrb[0].mxu0 }
 0x100   :  { %v104_v8 = vadd.f32 %v134_v5, %v103_v6  ;;  %v143_v9 = vpop.f32.mrb[1].mxu0 }
 0x101   :  { %v106_v10 = vpop.f32.mrb[2].mxu0 }
 0x102   :  { %v111_v11 = vadd.f32 %v110_v7, %v104_v8  ;;  %v107_v12 = vadd.f32 %v134_v5, %v106_v10  ;;  %v144_v13 = vpop.f32.mrb[3].mxu0 }
 0x104   :  { %v112_v14 = vadd.f32 %v110_v7, %v107_v12  ;;  %114 = vst.msk [vmem:[#allocation7] sm:$0xff] %vm113_vm2, %v111_v11 }
 0x106   :  { %115 = vst.msk [vmem:[#allocation7 + $0x8] sm:$0xff] %vm113_vm2, %v112_v14 }
 0x107   :  { %210 = shalt.err (!%p207_p6)
}
 0x108   :  { %s211_s22 = scalar_lea.hbm %s313_s4, 256 }
 0x109   :  { %p212_p7 = scmp.ne.s32.totalorder %s313_s4, %s211_s22  ;;  %p215_p8 = scmp.lt.u32.totalorder %s211_s22, %s313_s4 }
 0x10b   :  { %p217_p9 = pnand %p215_p8, %p212_p7 }
 0x10d   :  { %220 = shalt.err (!%p217_p9)
}
 0x10e   :  { %127 = dma.vmem_to_hbm [thread:$0]  %s122_s20, 256, %s313_s4, [#allocation4], %s228_s25, %s228_s25, %s229_s26  }
 0x10f   :  { %225 = dma.done.wait [#allocation4], 256  }
 0x110   :  { %226 = vsyncadd [#allocation4], 4294967040 }
 0x111   :  { %131 = vsyncpa [#allocation3], 1 }
 0x112   :  { %132 = vsyncpa [#allocation6], 1 }
 0x113   :  { %133 = vsyncpa [#allocation4], 1 }

</bundles_post_ra>
